<compile_context>
chip_gen: v6e
topology: v6e:2x2x1
jax: 0.10.0
libtpu: 0.0.40
codegen_flags: <defaults>
</compile_context>

<pallas_src>
from functools import partial

import jax
import jax.numpy as jnp
from jax.experimental import pallas as pl
from jax.experimental.pallas import tpu as pltpu

KERNEL_NUM = 100              # conv output channels (PyTorch kernel_num)
KSIZES = (3, 4, 5)            # conv kernel heights
TAPS = max(KSIZES)            # 5 taps (max kernel height)
KPAD = 128                    # conv channels padded 100 -> 128 (lane aligned)
PPAD = 128                    # padded class dim (lane-dense output block)
ROW_TARGET = 2048             # target MXU rows (Bt * L_pad) per batch tile


def _round_up(x, m):
    return ((x + m - 1) // m) * m


def textcnn_kernel(x_ref, wc_ref, bc_ref, mask_ref, wfc_ref, bfc_ref, out_ref,
                   *, batch_tile, l_pad, ksizes):
    """One batch tile: per-tap conv matmuls + bias/ReLU/mask/maxpool + FC."""
    bt = batch_tile
    e = x_ref.shape[-1]
    m = bt * l_pad

    x = x_ref[...]                                        # (Bt, L_ext, E) bf16
    # Hoist the shifted tap views once; reused across the three conv groups.
    x_taps = [x[:, dt:dt + l_pad, :].reshape(m, e) for dt in range(max(ksizes))]

    fc_acc = None
    for g, k in enumerate(ksizes):
        # Per-tap accumulating matmuls replace the HBM-materialized im2col:
        # only the embedding block is ever read from HBM.
        acc = jnp.dot(x_taps[0], wc_ref[g, 0],
                      preferred_element_type=jnp.float32)
        for dt in range(1, k):
            acc = acc + jnp.dot(x_taps[dt], wc_ref[g, dt],
                                preferred_element_type=jnp.float32)
        acc = jnp.maximum(acc + bc_ref[g], 0.0)           # bias + ReLU, (M, 128)
        # Grid-invariant validity mask (loaded, not rebuilt per step).  ReLU
        # output >= 0, so zeroing invalid time rows never changes the max --
        # PyTorch-exact conv+ReLU+maxpool semantics.
        acc = acc.reshape(bt, l_pad, acc.shape[-1]) * mask_ref[g][None]
        feat_g = jnp.max(acc, axis=1)                     # (Bt, 128)

        # Per-group FC contribution (padded rows/cols are zero -> exact).
        part = jnp.dot(feat_g.astype(wfc_ref.dtype), wfc_ref[g],
                       preferred_element_type=jnp.float32)
        fc_acc = part if fc_acc is None else fc_acc + part

    # TODO(synk): nn.Dropout is identity in eval mode; training-time dropout
    # (mask sampling) is intentionally not applied here.
    out_ref[...] = (fc_acc + bfc_ref[...]).astype(out_ref.dtype)


def _vmem_budget():
    """Generation-aware per-tile activation budget + explicit scoped limit."""
    try:
        cap = int(pltpu.get_tpu_info().vmem_capacity_bytes)
    except Exception:
        cap = 64 << 20                       # conservative: v7x per-TC VMEM
    budget = min(cap // 3, 24 << 20)         # per-tile activation budget
    limit = max(min((cap * 3) // 4, 100 << 20), 32 << 20)
    return budget, limit


def _choose_batch_tile(batch, l_pad, l_ext, embed_dim, budget):
    # Per-sample VMEM bytes in one tile: double-buffered bf16 x block, the
    # TAPS shifted bf16 slabs, and ~2 live f32 (L_pad, 128) activations.
    per_sample = (2 * l_ext * embed_dim * 2
                  + TAPS * l_pad * embed_dim * 2
                  + 2 * l_pad * KPAD * 4)
    # Grid-invariant inputs (double-buffered by the pipeline): conv + fc
    # weights and the time mask.
    fixed = 2 * (len(KSIZES) * TAPS * embed_dim * KPAD * 2
                 + len(KSIZES) * KPAD * PPAD * 2
                 + len(KSIZES) * l_pad * KPAD * 4)
    avail = max(per_sample, budget - fixed)
    bt = max(1, min(avail // per_sample, ROW_TARGET // l_pad, batch))
    # Keep >= 2 grid steps whenever possible so v7x's two TensorCores both get
    # work via the "parallel" axis (negligible cost on 1-TC v5e/v6e).
    if batch >= 2:
        bt = min(bt, -(-batch // 2))
    bt = int(bt)
    n_tiles = -(-batch // bt)
    return bt, n_tiles


def textcnn_forward(token_ids, params):
    emb_table = params["embedding"]
    B, L = token_ids.shape
    E = emb_table.shape[1]
    P = params["fc_b"].shape[0]
    K = KERNEL_NUM
    if L < max(KSIZES):
        raise ValueError(f"sequence length {L} must be >= {max(KSIZES)}")

    L_pad = _round_up(L, 8)                   # pooled/masked time rows
    L_ext = _round_up(L_pad + TAPS - 1, 8)    # loaded time rows (tap overhang)

    budget, vmem_limit = _vmem_budget()
    Bt, n_tiles = _choose_batch_tile(B, L_pad, L_ext, E, budget)
    B_pad = n_tiles * Bt

    # ---- glue (plain JAX): embedding gather + padding + weight packing ----
    # bf16 cast happens BEFORE padding so wrapper intermediates are half width.
    # TODO(synk): fuse the embedding row gather into the kernel via scalar-
    # prefetched token ids + manual DMA to drop this remaining HBM round trip.
    emb = emb_table[token_ids].astype(jnp.bfloat16)               # (B, L, E)
    x = jnp.pad(emb, ((0, B_pad - B), (0, L_ext - L), (0, 0)))    # (B_pad,L_ext,E)

    # Per-group/per-tap conv weights (3, 5, E, 128); unused taps stay zero.
    wc = jnp.zeros((len(KSIZES), TAPS, E, KPAD), jnp.float32)
    bc = jnp.zeros((len(KSIZES), 1, KPAD), jnp.float32)
    for g, k in enumerate(KSIZES):
        w = jnp.transpose(params[f"conv{k}_w"][:, 0], (1, 2, 0))  # (k, E, 100)
        wc = wc.at[g, :k, :, :K].set(w)
        bc = bc.at[g, 0, :K].set(params[f"conv{k}_b"])
    wc = wc.astype(jnp.bfloat16)

    # Grid-invariant time-validity mask, hoisted out of the kernel body.
    t = jnp.arange(L_pad)
    mask = jnp.stack([(t < (L - k + 1)).astype(jnp.float32) for k in KSIZES])
    mask = jnp.broadcast_to(mask[:, :, None], (len(KSIZES), L_pad, KPAD))

    # FC weights per conv group (3, 128, 128); padded rows/cols are zero so
    # the result matches the unpadded PyTorch FC exactly.
    wfc = jnp.zeros((len(KSIZES), KPAD, PPAD), jnp.float32)
    for g in range(len(KSIZES)):
        wfc = wfc.at[g, :K, :P].set(params["fc_w"][:, g * K:(g + 1) * K].T)
    wfc = wfc.astype(jnp.bfloat16)
    bfc = jnp.pad(params["fc_b"], (0, PPAD - P)).reshape(1, PPAD)
    bfc = bfc.astype(jnp.float32)

    kernel = partial(textcnn_kernel, batch_tile=Bt, l_pad=L_pad, ksizes=KSIZES)

    flops = n_tiles * (2 * Bt * L_pad * E * KPAD * sum(KSIZES)
                       + 2 * Bt * len(KSIZES) * KPAD * PPAD)
    bytes_accessed = (B_pad * L_ext * E * 2 + B_pad * PPAD * 4
                      + wc.size * 2 + wfc.size * 2
                      + (bc.size + bfc.size + mask.size) * 4)
    cost = pl.CostEstimate(flops=int(flops), transcendentals=0,
                           bytes_accessed=int(bytes_accessed))

    out = pl.pallas_call(
        kernel,
        out_shape=jax.ShapeDtypeStruct((n_tiles, Bt, PPAD), jnp.float32),
        grid_spec=pltpu.PrefetchScalarGridSpec(
            num_scalar_prefetch=0,
            grid=(n_tiles,),
            in_specs=[
                pl.BlockSpec((Bt, L_ext, E), lambda b: (b, 0, 0)),      # embeds
                pl.BlockSpec((len(KSIZES), TAPS, E, KPAD),
                             lambda b: (0, 0, 0, 0)),                   # conv W
                pl.BlockSpec((len(KSIZES), 1, KPAD), lambda b: (0, 0, 0)),  # conv b
                pl.BlockSpec((len(KSIZES), L_pad, KPAD),
                             lambda b: (0, 0, 0)),                      # time mask
                pl.BlockSpec((len(KSIZES), KPAD, PPAD),
                             lambda b: (0, 0, 0)),                      # fc W
                pl.BlockSpec((1, PPAD), lambda b: (0, 0)),              # fc b
            ],
            out_specs=pl.BlockSpec((None, Bt, PPAD), lambda b: (b, 0, 0)),
        ),
        compiler_params=pltpu.CompilerParams(
            dimension_semantics=("parallel",),
            vmem_limit_bytes=int(vmem_limit)),
        cost_estimate=cost,
    )(x, wc, bc, mask, wfc, bfc)

    return out.reshape(B_pad, PPAD)[:B, :P]


def textcnn_reference(token_ids, params):
    """Pure-JAX f32 reference (mirrors the PyTorch module in eval mode)."""
    emb = params["embedding"][token_ids]                  # (B, L, E)
    L = emb.shape[1]
    feats = []
    for k in KSIZES:
        w = params[f"conv{k}_w"][:, 0]                    # (100, k, E)
        b = params[f"conv{k}_b"]
        outs = [jnp.einsum("ble,cle->bc", emb[:, t:t + k], w) + b
                for t in range(L - k + 1)]
        conv = jnp.stack(outs, axis=1)                    # (B, L-k+1, 100)
        feats.append(jnp.max(jax.nn.relu(conv), axis=1))
    feat = jnp.concatenate(feats, axis=-1)
    return feat @ params["fc_w"].T + params["fc_b"]


def init_params(key, vocab_size, embed_dim, polarities_dim):
    ks = jax.random.split(key, 10)
    K = KERNEL_NUM
    params = {
        "embedding": jax.random.normal(ks[0], (vocab_size, embed_dim),
                                       jnp.float32) * 0.1,
        "fc_w": jax.random.normal(ks[1], (polarities_dim, 3 * K),
                                  jnp.float32) * 0.05,
        "fc_b": jax.random.normal(ks[2], (polarities_dim,), jnp.float32) * 0.01,
    }
    for i, k in enumerate(KSIZES):
        params[f"conv{k}_w"] = jax.random.normal(
            ks[3 + 2 * i], (K, 1, k, embed_dim), jnp.float32) * 0.05
        params[f"conv{k}_b"] = jax.random.normal(
            ks[4 + 2 * i], (K,), jnp.float32) * 0.01
    return params


if __name__ == "__main__":
    # Small, module-consistent shapes.
    B, L = 2, 16            # batch, sequence length
    VOCAB, E = 50, 32       # vocab size, opt.embed_dim
    P = 3                   # opt.polarities_dim

    key = jax.random.PRNGKey(0)
    k_tok, k_par = jax.random.split(key)
    params = init_params(k_par, VOCAB, E, P)
    token_ids = jax.random.randint(k_tok, (B, L), 0, VOCAB, dtype=jnp.int32)

    logits = jax.jit(textcnn_forward)(token_ids, params)
    jax.block_until_ready(logits)
    assert logits.shape == (B, P), logits.shape

    # Tolerance check vs. the f32 reference (bf16 MXU path, f32 accumulation).
    ref = textcnn_reference(token_ids, params)
    err = float(jnp.max(jnp.abs(logits - ref)))
    assert jnp.allclose(logits, ref, atol=3e-2, rtol=3e-2), err

    print("KERNEL_OK")
</pallas_src>

<mosaic_0001>
module attributes {stable_mosaic.version = 11 : i64} {
  func.func @textcnn_kernel(%arg0: i32, %arg1: memref<1x24x32xbf16, #tpu.memory_space<vmem>>, %arg2: memref<3x5x32x128xbf16, #tpu.memory_space<vmem>>, %arg3: memref<3x1x128xf32, #tpu.memory_space<vmem>>, %arg4: memref<3x16x128xf32, #tpu.memory_space<vmem>>, %arg5: memref<3x128x128xbf16, #tpu.memory_space<vmem>>, %arg6: memref<1x128xf32, #tpu.memory_space<vmem>>, %arg7: memref<1x1x128xf32, #tpu.memory_space<vmem>>) attributes {dimension_semantics = [#tpu.dimension_semantics<parallel>], iteration_bounds = array<i64: 2>, scalar_prefetch = 0 : i64, scratch_operands = 0 : i64, tpu.core_type = #tpu.core_type<tc>, window_params = [{transform_indices = @transform_0, window_bounds = array<i64: 1, 24, 32>}, {pipeline_mode = #tpu.pipeline_mode<synchronous>, transform_indices = @transform_1, window_bounds = array<i64: 3, 5, 32, 128>}, {pipeline_mode = #tpu.pipeline_mode<synchronous>, transform_indices = @transform_2, window_bounds = array<i64: 3, 1, 128>}, {pipeline_mode = #tpu.pipeline_mode<synchronous>, transform_indices = @transform_3, window_bounds = array<i64: 3, 16, 128>}, {pipeline_mode = #tpu.pipeline_mode<synchronous>, transform_indices = @transform_4, window_bounds = array<i64: 3, 128, 128>}, {pipeline_mode = #tpu.pipeline_mode<synchronous>, transform_indices = @transform_5, window_bounds = array<i64: 1, 128>}, {transform_indices = @transform_6, window_bounds = array<i64: 1, 1, 128>}]} {
    %c0 = arith.constant 0 : index
    %c0_0 = arith.constant 0 : index
    %c0_1 = arith.constant 0 : index
    %0 = vector.load %arg1[%c0, %c0_0, %c0_1] : memref<1x24x32xbf16, #tpu.memory_space<vmem>>, vector<1x24x32xbf16>
    %1 = vector.extract_strided_slice %0 {offsets = [0, 0, 0], sizes = [1, 16, 32], strides = [1, 1, 1]} : vector<1x24x32xbf16> to vector<1x16x32xbf16>
    %2 = vector.shape_cast %1 : vector<1x16x32xbf16> to vector<16x32xbf16>
    %3 = vector.extract_strided_slice %0 {offsets = [0, 1, 0], sizes = [1, 16, 32], strides = [1, 1, 1]} : vector<1x24x32xbf16> to vector<1x16x32xbf16>
    %4 = vector.shape_cast %3 : vector<1x16x32xbf16> to vector<16x32xbf16>
    %5 = vector.extract_strided_slice %0 {offsets = [0, 2, 0], sizes = [1, 16, 32], strides = [1, 1, 1]} : vector<1x24x32xbf16> to vector<1x16x32xbf16>
    %6 = vector.shape_cast %5 : vector<1x16x32xbf16> to vector<16x32xbf16>
    %7 = vector.extract_strided_slice %0 {offsets = [0, 3, 0], sizes = [1, 16, 32], strides = [1, 1, 1]} : vector<1x24x32xbf16> to vector<1x16x32xbf16>
    %8 = vector.shape_cast %7 : vector<1x16x32xbf16> to vector<16x32xbf16>
    %9 = vector.extract_strided_slice %0 {offsets = [0, 4, 0], sizes = [1, 16, 32], strides = [1, 1, 1]} : vector<1x24x32xbf16> to vector<1x16x32xbf16>
    %10 = vector.shape_cast %9 : vector<1x16x32xbf16> to vector<16x32xbf16>
    %c0_2 = arith.constant 0 : index
    %c0_3 = arith.constant 0 : index
    %c0_4 = arith.constant 0 : index
    %c0_5 = arith.constant 0 : index
    %11 = vector.load %arg2[%c0_2, %c0_3, %c0_4, %c0_5] : memref<3x5x32x128xbf16, #tpu.memory_space<vmem>>, vector<1x1x32x128xbf16>
    %12 = vector.shape_cast %11 : vector<1x1x32x128xbf16> to vector<32x128xbf16>
    %cst = arith.constant dense<0.000000e+00> : vector<16x128xf32>
    %13 = tpu.matmul %2, %12, %cst {dimension_numbers = #tpu.dot_dimension_numbers<[1], [0], [0], [1], [0, 0, 1, 1], [], []>} : vector<16x32xbf16>, vector<32x128xbf16>, vector<16x128xf32> -> vector<16x128xf32>
    %c0_6 = arith.constant 0 : index
    %c1 = arith.constant 1 : index
    %c0_7 = arith.constant 0 : index
    %c0_8 = arith.constant 0 : index
    %14 = vector.load %arg2[%c0_6, %c1, %c0_7, %c0_8] : memref<3x5x32x128xbf16, #tpu.memory_space<vmem>>, vector<1x1x32x128xbf16>
    %15 = vector.shape_cast %14 : vector<1x1x32x128xbf16> to vector<32x128xbf16>
    %cst_9 = arith.constant dense<0.000000e+00> : vector<16x128xf32>
    %16 = tpu.matmul %4, %15, %cst_9 {dimension_numbers = #tpu.dot_dimension_numbers<[1], [0], [0], [1], [0, 0, 1, 1], [], []>} : vector<16x32xbf16>, vector<32x128xbf16>, vector<16x128xf32> -> vector<16x128xf32>
    %17 = arith.addf %13, %16 : vector<16x128xf32>
    %c0_10 = arith.constant 0 : index
    %c2 = arith.constant 2 : index
    %c0_11 = arith.constant 0 : index
    %c0_12 = arith.constant 0 : index
    %18 = vector.load %arg2[%c0_10, %c2, %c0_11, %c0_12] : memref<3x5x32x128xbf16, #tpu.memory_space<vmem>>, vector<1x1x32x128xbf16>
    %19 = vector.shape_cast %18 : vector<1x1x32x128xbf16> to vector<32x128xbf16>
    %cst_13 = arith.constant dense<0.000000e+00> : vector<16x128xf32>
    %20 = tpu.matmul %6, %19, %cst_13 {dimension_numbers = #tpu.dot_dimension_numbers<[1], [0], [0], [1], [0, 0, 1, 1], [], []>} : vector<16x32xbf16>, vector<32x128xbf16>, vector<16x128xf32> -> vector<16x128xf32>
    %21 = arith.addf %17, %20 : vector<16x128xf32>
    %c0_14 = arith.constant 0 : index
    %c0_15 = arith.constant 0 : index
    %c0_16 = arith.constant 0 : index
    %22 = vector.load %arg3[%c0_14, %c0_15, %c0_16] : memref<3x1x128xf32, #tpu.memory_space<vmem>>, vector<1x1x128xf32>
    %23 = vector.shape_cast %22 : vector<1x1x128xf32> to vector<1x128xf32>
    %24 = vector.broadcast %23 : vector<1x128xf32> to vector<16x128xf32>
    %25 = arith.addf %21, %24 : vector<16x128xf32>
    %cst_17 = arith.constant 0.000000e+00 : f32
    %26 = vector.broadcast %cst_17 : f32 to vector<16x128xf32>
    %27 = arith.maximumf %25, %26 : vector<16x128xf32>
    %28 = vector.shape_cast %27 : vector<16x128xf32> to vector<1x16x128xf32>
    %c0_18 = arith.constant 0 : index
    %c0_19 = arith.constant 0 : index
    %c0_20 = arith.constant 0 : index
    %29 = vector.load %arg4[%c0_18, %c0_19, %c0_20] : memref<3x16x128xf32, #tpu.memory_space<vmem>>, vector<1x16x128xf32>
    %30 = vector.shape_cast %29 : vector<1x16x128xf32> to vector<16x128xf32>
    %31 = vector.shape_cast %30 : vector<16x128xf32> to vector<1x16x128xf32>
    %32 = arith.mulf %28, %31 : vector<1x16x128xf32>
    %cst_21 = arith.constant dense<0xFF800000> : vector<1x128xf32>
    %33 = vector.multi_reduction <maximumf>, %32, %cst_21 [1] : vector<1x16x128xf32> to vector<1x128xf32>
    %34 = arith.truncf %33 : vector<1x128xf32> to vector<1x128xbf16>
    %c0_22 = arith.constant 0 : index
    %c0_23 = arith.constant 0 : index
    %c0_24 = arith.constant 0 : index
    %35 = vector.load %arg5[%c0_22, %c0_23, %c0_24] : memref<3x128x128xbf16, #tpu.memory_space<vmem>>, vector<1x128x128xbf16>
    %36 = vector.shape_cast %35 : vector<1x128x128xbf16> to vector<128x128xbf16>
    %cst_25 = arith.constant dense<0.000000e+00> : vector<1x128xf32>
    %37 = tpu.matmul %34, %36, %cst_25 {dimension_numbers = #tpu.dot_dimension_numbers<[1], [0], [0], [1], [0, 0, 1, 1], [], []>} : vector<1x128xbf16>, vector<128x128xbf16>, vector<1x128xf32> -> vector<1x128xf32>
    %c1_26 = arith.constant 1 : index
    %c0_27 = arith.constant 0 : index
    %c0_28 = arith.constant 0 : index
    %c0_29 = arith.constant 0 : index
    %38 = vector.load %arg2[%c1_26, %c0_27, %c0_28, %c0_29] : memref<3x5x32x128xbf16, #tpu.memory_space<vmem>>, vector<1x1x32x128xbf16>
    %39 = vector.shape_cast %38 : vector<1x1x32x128xbf16> to vector<32x128xbf16>
    %cst_30 = arith.constant dense<0.000000e+00> : vector<16x128xf32>
    %40 = tpu.matmul %2, %39, %cst_30 {dimension_numbers = #tpu.dot_dimension_numbers<[1], [0], [0], [1], [0, 0, 1, 1], [], []>} : vector<16x32xbf16>, vector<32x128xbf16>, vector<16x128xf32> -> vector<16x128xf32>
    %c1_31 = arith.constant 1 : index
    %c1_32 = arith.constant 1 : index
    %c0_33 = arith.constant 0 : index
    %c0_34 = arith.constant 0 : index
    %41 = vector.load %arg2[%c1_31, %c1_32, %c0_33, %c0_34] : memref<3x5x32x128xbf16, #tpu.memory_space<vmem>>, vector<1x1x32x128xbf16>
    %42 = vector.shape_cast %41 : vector<1x1x32x128xbf16> to vector<32x128xbf16>
    %cst_35 = arith.constant dense<0.000000e+00> : vector<16x128xf32>
    %43 = tpu.matmul %4, %42, %cst_35 {dimension_numbers = #tpu.dot_dimension_numbers<[1], [0], [0], [1], [0, 0, 1, 1], [], []>} : vector<16x32xbf16>, vector<32x128xbf16>, vector<16x128xf32> -> vector<16x128xf32>
    %44 = arith.addf %40, %43 : vector<16x128xf32>
    %c1_36 = arith.constant 1 : index
    %c2_37 = arith.constant 2 : index
    %c0_38 = arith.constant 0 : index
    %c0_39 = arith.constant 0 : index
    %45 = vector.load %arg2[%c1_36, %c2_37, %c0_38, %c0_39] : memref<3x5x32x128xbf16, #tpu.memory_space<vmem>>, vector<1x1x32x128xbf16>
    %46 = vector.shape_cast %45 : vector<1x1x32x128xbf16> to vector<32x128xbf16>
    %cst_40 = arith.constant dense<0.000000e+00> : vector<16x128xf32>
    %47 = tpu.matmul %6, %46, %cst_40 {dimension_numbers = #tpu.dot_dimension_numbers<[1], [0], [0], [1], [0, 0, 1, 1], [], []>} : vector<16x32xbf16>, vector<32x128xbf16>, vector<16x128xf32> -> vector<16x128xf32>
    %48 = arith.addf %44, %47 : vector<16x128xf32>
    %c1_41 = arith.constant 1 : index
    %c3 = arith.constant 3 : index
    %c0_42 = arith.constant 0 : index
    %c0_43 = arith.constant 0 : index
    %49 = vector.load %arg2[%c1_41, %c3, %c0_42, %c0_43] : memref<3x5x32x128xbf16, #tpu.memory_space<vmem>>, vector<1x1x32x128xbf16>
    %50 = vector.shape_cast %49 : vector<1x1x32x128xbf16> to vector<32x128xbf16>
    %cst_44 = arith.constant dense<0.000000e+00> : vector<16x128xf32>
    %51 = tpu.matmul %8, %50, %cst_44 {dimension_numbers = #tpu.dot_dimension_numbers<[1], [0], [0], [1], [0, 0, 1, 1], [], []>} : vector<16x32xbf16>, vector<32x128xbf16>, vector<16x128xf32> -> vector<16x128xf32>
    %52 = arith.addf %48, %51 : vector<16x128xf32>
    %c1_45 = arith.constant 1 : index
    %c0_46 = arith.constant 0 : index
    %c0_47 = arith.constant 0 : index
    %53 = vector.load %arg3[%c1_45, %c0_46, %c0_47] : memref<3x1x128xf32, #tpu.memory_space<vmem>>, vector<1x1x128xf32>
    %54 = vector.shape_cast %53 : vector<1x1x128xf32> to vector<1x128xf32>
    %55 = vector.broadcast %54 : vector<1x128xf32> to vector<16x128xf32>
    %56 = arith.addf %52, %55 : vector<16x128xf32>
    %cst_48 = arith.constant 0.000000e+00 : f32
    %57 = vector.broadcast %cst_48 : f32 to vector<16x128xf32>
    %58 = arith.maximumf %56, %57 : vector<16x128xf32>
    %59 = vector.shape_cast %58 : vector<16x128xf32> to vector<1x16x128xf32>
    %c1_49 = arith.constant 1 : index
    %c0_50 = arith.constant 0 : index
    %c0_51 = arith.constant 0 : index
    %60 = vector.load %arg4[%c1_49, %c0_50, %c0_51] : memref<3x16x128xf32, #tpu.memory_space<vmem>>, vector<1x16x128xf32>
    %61 = vector.shape_cast %60 : vector<1x16x128xf32> to vector<16x128xf32>
    %62 = vector.shape_cast %61 : vector<16x128xf32> to vector<1x16x128xf32>
    %63 = arith.mulf %59, %62 : vector<1x16x128xf32>
    %cst_52 = arith.constant dense<0xFF800000> : vector<1x128xf32>
    %64 = vector.multi_reduction <maximumf>, %63, %cst_52 [1] : vector<1x16x128xf32> to vector<1x128xf32>
    %65 = arith.truncf %64 : vector<1x128xf32> to vector<1x128xbf16>
    %c1_53 = arith.constant 1 : index
    %c0_54 = arith.constant 0 : index
    %c0_55 = arith.constant 0 : index
    %66 = vector.load %arg5[%c1_53, %c0_54, %c0_55] : memref<3x128x128xbf16, #tpu.memory_space<vmem>>, vector<1x128x128xbf16>
    %67 = vector.shape_cast %66 : vector<1x128x128xbf16> to vector<128x128xbf16>
    %cst_56 = arith.constant dense<0.000000e+00> : vector<1x128xf32>
    %68 = tpu.matmul %65, %67, %cst_56 {dimension_numbers = #tpu.dot_dimension_numbers<[1], [0], [0], [1], [0, 0, 1, 1], [], []>} : vector<1x128xbf16>, vector<128x128xbf16>, vector<1x128xf32> -> vector<1x128xf32>
    %69 = arith.addf %37, %68 : vector<1x128xf32>
    %c2_57 = arith.constant 2 : index
    %c0_58 = arith.constant 0 : index
    %c0_59 = arith.constant 0 : index
    %c0_60 = arith.constant 0 : index
    %70 = vector.load %arg2[%c2_57, %c0_58, %c0_59, %c0_60] : memref<3x5x32x128xbf16, #tpu.memory_space<vmem>>, vector<1x1x32x128xbf16>
    %71 = vector.shape_cast %70 : vector<1x1x32x128xbf16> to vector<32x128xbf16>
    %cst_61 = arith.constant dense<0.000000e+00> : vector<16x128xf32>
    %72 = tpu.matmul %2, %71, %cst_61 {dimension_numbers = #tpu.dot_dimension_numbers<[1], [0], [0], [1], [0, 0, 1, 1], [], []>} : vector<16x32xbf16>, vector<32x128xbf16>, vector<16x128xf32> -> vector<16x128xf32>
    %c2_62 = arith.constant 2 : index
    %c1_63 = arith.constant 1 : index
    %c0_64 = arith.constant 0 : index
    %c0_65 = arith.constant 0 : index
    %73 = vector.load %arg2[%c2_62, %c1_63, %c0_64, %c0_65] : memref<3x5x32x128xbf16, #tpu.memory_space<vmem>>, vector<1x1x32x128xbf16>
    %74 = vector.shape_cast %73 : vector<1x1x32x128xbf16> to vector<32x128xbf16>
    %cst_66 = arith.constant dense<0.000000e+00> : vector<16x128xf32>
    %75 = tpu.matmul %4, %74, %cst_66 {dimension_numbers = #tpu.dot_dimension_numbers<[1], [0], [0], [1], [0, 0, 1, 1], [], []>} : vector<16x32xbf16>, vector<32x128xbf16>, vector<16x128xf32> -> vector<16x128xf32>
    %76 = arith.addf %72, %75 : vector<16x128xf32>
    %c2_67 = arith.constant 2 : index
    %c2_68 = arith.constant 2 : index
    %c0_69 = arith.constant 0 : index
    %c0_70 = arith.constant 0 : index
    %77 = vector.load %arg2[%c2_67, %c2_68, %c0_69, %c0_70] : memref<3x5x32x128xbf16, #tpu.memory_space<vmem>>, vector<1x1x32x128xbf16>
    %78 = vector.shape_cast %77 : vector<1x1x32x128xbf16> to vector<32x128xbf16>
    %cst_71 = arith.constant dense<0.000000e+00> : vector<16x128xf32>
    %79 = tpu.matmul %6, %78, %cst_71 {dimension_numbers = #tpu.dot_dimension_numbers<[1], [0], [0], [1], [0, 0, 1, 1], [], []>} : vector<16x32xbf16>, vector<32x128xbf16>, vector<16x128xf32> -> vector<16x128xf32>
    %80 = arith.addf %76, %79 : vector<16x128xf32>
    %c2_72 = arith.constant 2 : index
    %c3_73 = arith.constant 3 : index
    %c0_74 = arith.constant 0 : index
    %c0_75 = arith.constant 0 : index
    %81 = vector.load %arg2[%c2_72, %c3_73, %c0_74, %c0_75] : memref<3x5x32x128xbf16, #tpu.memory_space<vmem>>, vector<1x1x32x128xbf16>
    %82 = vector.shape_cast %81 : vector<1x1x32x128xbf16> to vector<32x128xbf16>
    %cst_76 = arith.constant dense<0.000000e+00> : vector<16x128xf32>
    %83 = tpu.matmul %8, %82, %cst_76 {dimension_numbers = #tpu.dot_dimension_numbers<[1], [0], [0], [1], [0, 0, 1, 1], [], []>} : vector<16x32xbf16>, vector<32x128xbf16>, vector<16x128xf32> -> vector<16x128xf32>
    %84 = arith.addf %80, %83 : vector<16x128xf32>
    %c2_77 = arith.constant 2 : index
    %c4 = arith.constant 4 : index
    %c0_78 = arith.constant 0 : index
    %c0_79 = arith.constant 0 : index
    %85 = vector.load %arg2[%c2_77, %c4, %c0_78, %c0_79] : memref<3x5x32x128xbf16, #tpu.memory_space<vmem>>, vector<1x1x32x128xbf16>
    %86 = vector.shape_cast %85 : vector<1x1x32x128xbf16> to vector<32x128xbf16>
    %cst_80 = arith.constant dense<0.000000e+00> : vector<16x128xf32>
    %87 = tpu.matmul %10, %86, %cst_80 {dimension_numbers = #tpu.dot_dimension_numbers<[1], [0], [0], [1], [0, 0, 1, 1], [], []>} : vector<16x32xbf16>, vector<32x128xbf16>, vector<16x128xf32> -> vector<16x128xf32>
    %88 = arith.addf %84, %87 : vector<16x128xf32>
    %c2_81 = arith.constant 2 : index
    %c0_82 = arith.constant 0 : index
    %c0_83 = arith.constant 0 : index
    %89 = vector.load %arg3[%c2_81, %c0_82, %c0_83] : memref<3x1x128xf32, #tpu.memory_space<vmem>>, vector<1x1x128xf32>
    %90 = vector.shape_cast %89 : vector<1x1x128xf32> to vector<1x128xf32>
    %91 = vector.broadcast %90 : vector<1x128xf32> to vector<16x128xf32>
    %92 = arith.addf %88, %91 : vector<16x128xf32>
    %cst_84 = arith.constant 0.000000e+00 : f32
    %93 = vector.broadcast %cst_84 : f32 to vector<16x128xf32>
    %94 = arith.maximumf %92, %93 : vector<16x128xf32>
    %95 = vector.shape_cast %94 : vector<16x128xf32> to vector<1x16x128xf32>
    %c2_85 = arith.constant 2 : index
    %c0_86 = arith.constant 0 : index
    %c0_87 = arith.constant 0 : index
    %96 = vector.load %arg4[%c2_85, %c0_86, %c0_87] : memref<3x16x128xf32, #tpu.memory_space<vmem>>, vector<1x16x128xf32>
    %97 = vector.shape_cast %96 : vector<1x16x128xf32> to vector<16x128xf32>
    %98 = vector.shape_cast %97 : vector<16x128xf32> to vector<1x16x128xf32>
    %99 = arith.mulf %95, %98 : vector<1x16x128xf32>
    %cst_88 = arith.constant dense<0xFF800000> : vector<1x128xf32>
    %100 = vector.multi_reduction <maximumf>, %99, %cst_88 [1] : vector<1x16x128xf32> to vector<1x128xf32>
    %101 = arith.truncf %100 : vector<1x128xf32> to vector<1x128xbf16>
    %c2_89 = arith.constant 2 : index
    %c0_90 = arith.constant 0 : index
    %c0_91 = arith.constant 0 : index
    %102 = vector.load %arg5[%c2_89, %c0_90, %c0_91] : memref<3x128x128xbf16, #tpu.memory_space<vmem>>, vector<1x128x128xbf16>
    %103 = vector.shape_cast %102 : vector<1x128x128xbf16> to vector<128x128xbf16>
    %cst_92 = arith.constant dense<0.000000e+00> : vector<1x128xf32>
    %104 = tpu.matmul %101, %103, %cst_92 {dimension_numbers = #tpu.dot_dimension_numbers<[1], [0], [0], [1], [0, 0, 1, 1], [], []>} : vector<1x128xbf16>, vector<128x128xbf16>, vector<1x128xf32> -> vector<1x128xf32>
    %105 = arith.addf %69, %104 : vector<1x128xf32>
    %c0_93 = arith.constant 0 : index
    %c0_94 = arith.constant 0 : index
    %106 = vector.load %arg6[%c0_93, %c0_94] : memref<1x128xf32, #tpu.memory_space<vmem>>, vector<1x128xf32>
    %107 = arith.addf %105, %106 : vector<1x128xf32>
    %c0_95 = arith.constant 0 : index
    %c0_96 = arith.constant 0 : index
    %c0_97 = arith.constant 0 : index
    %108 = vector.load %arg7[%c0_95, %c0_96, %c0_97] : memref<1x1x128xf32, #tpu.memory_space<vmem>>, vector<1x1x128xf32>
    %109 = vector.shape_cast %108 : vector<1x1x128xf32> to vector<1x128xf32>
    %110 = vector.shape_cast %107 : vector<1x128xf32> to vector<1x1x128xf32>
    tpu.vector_store %arg7[%c0_95, %c0_96, %c0_97], %110 {strides = array<i32>} : memref<1x1x128xf32, #tpu.memory_space<vmem>>, vector<1x1x128xf32>,
    return
  }
  func.func @transform_0(%arg0: i32) -> (i32, i32, i32) {
    %c0_i32 = arith.constant 0 : i32
    %c0_i32_0 = arith.constant 0 : i32
    %c0_i32_1 = arith.constant 0 : i32
    return %arg0, %c0_i32, %c0_i32_0 : i32, i32, i32
  }
  func.func @transform_1(%arg0: i32) -> (i32, i32, i32, i32) {
    %c0_i32 = arith.constant 0 : i32
    %c0_i32_0 = arith.constant 0 : i32
    %c0_i32_1 = arith.constant 0 : i32
    %c0_i32_2 = arith.constant 0 : i32
    %c0_i32_3 = arith.constant 0 : i32
    return %c0_i32, %c0_i32_0, %c0_i32_1, %c0_i32_2 : i32, i32, i32, i32
  }
  func.func @transform_2(%arg0: i32) -> (i32, i32, i32) {
    %c0_i32 = arith.constant 0 : i32
    %c0_i32_0 = arith.constant 0 : i32
    %c0_i32_1 = arith.constant 0 : i32
    %c0_i32_2 = arith.constant 0 : i32
    return %c0_i32, %c0_i32_0, %c0_i32_1 : i32, i32, i32
  }
  func.func @transform_3(%arg0: i32) -> (i32, i32, i32) {
    %c0_i32 = arith.constant 0 : i32
    %c0_i32_0 = arith.constant 0 : i32
    %c0_i32_1 = arith.constant 0 : i32
    %c0_i32_2 = arith.constant 0 : i32
    return %c0_i32, %c0_i32_0, %c0_i32_1 : i32, i32, i32
  }
  func.func @transform_4(%arg0: i32) -> (i32, i32, i32) {
    %c0_i32 = arith.constant 0 : i32
    %c0_i32_0 = arith.constant 0 : i32
    %c0_i32_1 = arith.constant 0 : i32
    %c0_i32_2 = arith.constant 0 : i32
    return %c0_i32, %c0_i32_0, %c0_i32_1 : i32, i32, i32
  }
  func.func @transform_5(%arg0: i32) -> (i32, i32) {
    %c0_i32 = arith.constant 0 : i32
    %c0_i32_0 = arith.constant 0 : i32
    %c0_i32_1 = arith.constant 0 : i32
    return %c0_i32, %c0_i32_0 : i32, i32
  }
  func.func @transform_6(%arg0: i32) -> (i32, i32, i32) {
    %c0_i32 = arith.constant 0 : i32
    %c0_i32_0 = arith.constant 0 : i32
    %c0_i32_1 = arith.constant 0 : i32
    return %arg0, %c0_i32, %c0_i32_0 : i32, i32, i32
  }
}

</mosaic_0001>

<bundles_post_ra>
// kernel: textcnn_forward.1
= control target key start
LH: loop header
LB: loop body
LE: loop exit
PB: predicated region body
PF: predicated region fallthrough
CT: control target
= control target key end

     0   :  { %11 = vsyncpa [#allocation3], 0  ;;  %s2434_s0 = inlined_call_operand.vmem [shape: bf16[2,24,32], index: 0, kind: input, shape index: {}]   ;;  %s2435_s1 = inlined_call_operand.vmem [shape: bf16[3,5,32,128], index: 1, kind: input, shape index: {}]   ;;  %s2436_s2 = inlined_call_operand.vmem [shape: f32[3,1,128], index: 2, kind: input, shape index: {}]   ;;  %s2437_s3 = inlined_call_operand.vmem [shape: f32[3,16,128], index: 3, kind: input, shape index: {}]   ;;  %s2438_s4 = inlined_call_operand.vmem [shape: bf16[3,128,128], index: 4, kind: input, shape index: {}]   ;;  %s2439_s5 = inlined_call_operand.vmem [shape: f32[1,128], index: 5, kind: input, shape index: {}]   ;;  %s2440_s6 = inlined_call_operand.hbm [shape: f32[2,1,128], index: 6, kind: output, shape index: {}]  }
   0x1   :  { %13 = vsyncpa [#allocation3 + $0x1], 0  ;;  %s2039_s21 = smov 0   ;;  %s2041_s22 = smov 0  }
   0x2   :  { %s2043_s23 = smov 0   ;;  %s2045_s24 = smov 0  }
   0x3 LB: > { %s2060_s25 = sadd.s32 4294967295, %s1999_s24   ;;  %s1473_s26 = sadd.s32 4294967294, %s1999_s24   ;;  %s1999_s24 = sphi %s2045_s24, %s2446_s24   ;;  %s1995_s23 = sphi %s2043_s23, %s2445_s23   ;;  %s1991_s22 = sphi %s2041_s22, %s2444_s22   ;;  %s1987_s21 = sphi %s2039_s21, %s2443_s21  }
   0x4   : > { %s2064_s27 = sadd.s32 1, %s1999_s24   ;;  %s157_s28 = sadd.s32 1, %s1995_s23 }
   0x5   : > { %s154_s29 = ssub.s32 %s1999_s24, %s2064_s27  ;;  %p167_p0 = scmp.ne.s32.totalorder %s1995_s23, %s1991_s22 }
   0x6   : > { %p155_p1 = scmp.eq.s32.totalorder %s154_s29, 0  ;;  %p168_p2 = scmp.eq.s32.totalorder %s2060_s25, 1 }
   0x7   : > { %p173_p3 = scmp.ne.s32.totalorder %s1991_s22, %s1987_s21  ;;  %p174_p4 = scmp.eq.s32.totalorder %s1473_s26, 1 }
   0x8   : > { %s2075_s30 = scalar_select %p155_p1, %s1995_s23, %s157_s28  }
   0x9   : > { %p2077_p5 = por %p168_p2, %p167_p0  ;;  %p2081_p6 = por %p174_p4, %p173_p3 }
   0xa   : > { %p1476_p7 = scmp.ge.s32.totalorder %s1999_s24, 1  ;;  %p215_p8 = scmp.lt.s32.totalorder %s1999_s24, 3 }
   0xc   : > { %p216_p9 = pnand %p1476_p7, %p215_p8 }
   0xd   : > { %p244_p10 = scmp.lt.s32.totalorder (!%p216_p9), %s2060_s25, 1  ;;  %s242_s29 = sand.u32 (!%p216_p9), 1, %s1991_s22  }
   0xe   : > { %219 = sbr.rel (%p216_p9) target bundleno = 743 (0x2e7), region = 44  ;;  %s1625_s11 = sshll.u32 (!%p216_p9), %s2060_s25, 4 }
   0xf   : > { %s243_s12 = scalar_lea.vmem (!%p216_p9), [#allocation2], %s242_s29  ;;  %s2393_s16 = scalar_lea.hbm (!%p216_p9), %s2440_s6, %s1625_s11 }
  0x10   : > { %s1406_s17 = scalar_lea.sflag (!%p216_p9), [#allocation3], %s242_s29  ;;  %s2003_s18 = smov (!%p216_p9), [#allocation2]  }
  0x13   : > { %v1889_v0 = vld [vmem:[%s2435_s1 + $0x18] sm:$0xff]   ;;  %v2001_v1 = vmov 0.0   ;;  %v1890_v2 = vld [vmem:[%s2435_s1 + $0x10] sm:$0xff]   ;;  %vm2002_vm0 = vmmov 0   ;;  %s245_s13 = scalar_select %p244_p10, %s2060_s25, 1  ;;  %vm295_vm2 = vcmask 261120  }
  0x14   : > { %1691 = vmatprep.subr.bf16.mxu1 %v2001_v1  ;;  %1723 = vmatprep.subr.bf16.mxu0 %v2001_v1  ;;  %v1897_v3 = vld [vmem:[%s2435_s1 + $0x58] sm:$0xff]   ;;  %v1899_v6 = vld [vmem:[%s2435_s1 + $0x50] sm:$0xff]   ;;  %vm270_vm1 = vsmask.f32 7424  ;;  %v1901_v10 = vld [vmem:[%s2435_s1 + $0x88] sm:$0xff]   ;;  %vm400_vm4 = vcmask 1046528  }
  0x15   : > { %1692 = vmatpush3.bf16.msra.mxu1 %v1889_v0  ;;  %1695 = vmatprep.mubr.msk.bf16.mxu1 %vm2002_vm0, %v2001_v1  ;;  %s1847_s14 = smul.u32 12, %s245_s13  ;;  %v1893_v14 = vld [vmem:[%s2435_s1 + $0x8] sm:$0xff]   ;;  %v1903_v19 = vld [vmem:[%s2435_s1 + $0x80] sm:$0xff]   ;;  %vm682_vm3 = vsmask.f32 6400  ;;  %v1902_v33 = vld [vmem:[%s2435_s1 + $0x78] sm:$0xff]  }
  0x16   : > { %1693 = vmatprep.subr.bf16.mxu1 %v2001_v1  ;;  %1727 = vmatprep.mubr.msk.bf16.mxu0 %vm2002_vm0, %v2001_v1  ;;  %v1894_v22 = vld [vmem:[%s2435_s1] sm:$0xff]   ;;  %v1895_v27 = vld [vmem:[%s2435_s1 + $0x28] sm:$0xff]   ;;  %v1904_v34 = vld [vmem:[%s2435_s1 + $0x70] sm:$0xff]   ;;  %vm1209_vm5 = vcmask 1045504   ;;  %s1418_s13 = sshll.u32 %s243_s12, 4  ;;  %s2395_s13 = int_to_ptr.vmem [resolvable:$true] %s1418_s13 }
  0x17   : > { %s248_s19 = scalar_lea.vmem %s2434_s0, %s1847_s14  ;;  %1724 = vmatpush3.bf16.msra.mxu0 %v1897_v3  ;;  %v1896_v29 = vld [vmem:[%s2435_s1 + $0x20] sm:$0xff]   ;;  %v1898_v30 = vld [vmem:[%s2435_s1 + $0x68] sm:$0xff]   ;;  %v1905_v35 = vld [vmem:[%s2438_s4 + $0x38] sm:$0xff]   ;;  %s1939_s25 = scalar_lea.vmem %s2395_s13, 16 }
  0x18   : > { %v2109_v4 = vld [vmem:[%s248_s19] sm:$0xff]   ;;  %v2111_v5 = vld [vmem:[%s248_s19 + $0x8] ss:$0 sps:$4 sm:$0xff]   ;;  %1725 = vmatprep.subr.bf16.mxu0 %v2001_v1  ;;  %v1906_v36 = vld [vmem:[%s2438_s4 + $0x30] sm:$0xff]   ;;  %p1940_p11 = scmp.ne.s32.totalorder %s2395_s13, %s1939_s25  ;;  %s1943_s19 = sshll.u32 %s2003_s18, 4  ;;  %s1944_s19 = int_to_ptr.vmem [resolvable:$false] %s1943_s19 }
  0x19   : > { %1694 = vmatpush3.bf16.msra.mxu1 %v1890_v2  ;;  %v272_v7 = vshrl.u32 %v2109_v4, 16  ;;  %v274_v8 = vshll.u32 %v2109_v4, 16  ;;  %v279_v9 = vshll.u32 %v2111_v5, 16  ;;  %v401_v15 = vrot.slane %v2109_v4, 1  ;;  %v1900_v32 = vld [vmem:[%s2435_s1 + $0x60] sm:$0xff]   ;;  %v1907_v37 = vld [vmem:[%s2438_s4 + $0x28] sm:$0xff]   ;;  %p1946_p0 = scmp.lt.s32.totalorder %s2395_s13, %s1944_s19 }
  0x1a   : > { %1699 = vmatprep.subr.bf16.mxu1 %v2001_v1  ;;  %v686_v20 = vshrl.u32 %v2111_v5, 16  ;;  %v402_v23 = vrot.slane %v2111_v5, 1  ;;  %v1908_v38 = vld [vmem:[%s2438_s4 + $0x20] sm:$0xff]   ;;  %v1909_v39 = vld [vmem:[%s2438_s4 + $0x18] sm:$0xff]   ;;  %v1911_v41 = vld [vmem:[%s2438_s4 + $0x10] sm:$0xff]   ;;  %p1941_p12 = pnand %p1940_p11, %p2077_p5  ;;  %s1945_s20 = scalar_lea.vmem %s1944_s19, 32 }
  0x1b   : > { %1726 = vmatpush3.bf16.msra.mxu0 %v1899_v6  ;;  %v276_v11 = vrot.slane %v274_v8, 1  ;;  %v281_v12 = vrot.slane %v279_v9, 1  ;;  %v683_v13 = vrot.slane %v272_v7, 1  ;;  %v689_v17 = vrot.slane %v279_v9, 2  ;;  %v1910_v40 = vld [vmem:[%s2438_s4 + $0x78] sm:$0xff]   ;;  %v1912_v42 = vld [vmem:[%s2438_s4 + $0x70] sm:$0xff]   ;;  %p1947_p1 = scmp.lt.s32.totalorder %s1945_s20, %s1939_s25 }
  0x1c   : > { %1739 = vmatprep.subr.bf16.mxu0 %v2001_v1  ;;  %v684_v18 = vrot.slane %v274_v8, 2  ;;  %v688_v25 = vrot.slane %v686_v20, 1  ;;  %v2173_v31 = vsel %vm400_vm4, %v401_v15, %v402_v23  ;;  %v1913_v43 = vld [vmem:[%s2438_s4 + $0x8] sm:$0xff]   ;;  %v1915_v45 = vld [vmem:[%s2438_s4] sm:$0xff]   ;;  %v1917_v47 = vld [vmem:[%s2438_s4 + $0x58] sm:$0xff]   ;;  %p1942_p13 = pneg %p1941_p12 }
  0x1d   : > { %v277_v16 = vor.u32 %v276_v11, %v272_v7  ;;  %v1914_v44 = vld [vmem:[%s2438_s4 + $0x68] sm:$0xff]   ;;  %v1916_v46 = vld [vmem:[%s2438_s4 + $0x60] sm:$0xff]   ;;  %v1918_v48 = vld [vmem:[%s2438_s4 + $0x50] sm:$0xff]   ;;  %p1948_p2 = por %p1947_p1, %p1946_p0 }
  0x1e   : > { %1728 = vmatmul.mubr.msk.bf16.vlgmr.msra.gmra.mxu0 %vm295_vm2, %v2109_v4  ;;  %v685_v24 = vor.u32 %v684_v18, %v683_v13  ;;  %v690_v26 = vor.u32 %v689_v17, %v688_v25  ;;  %v1919_v49 = vld [vmem:[%s2438_s4 + $0x48] sm:$0xff]   ;;  %v1920_v50 = vld [vmem:[%s2438_s4 + $0x40] sm:$0xff]  }
  0x1f   : > { %1740 = vmatpush3.bf16.msra.mxu0 %v1901_v10  ;;  %1743 = vmatprep.mubr.msk.bf16.mxu0 %vm2002_vm0, %v2001_v1  ;;  %v2137_v21 = vsel %vm270_vm1, %v277_v16, %v281_v12  ;;  %v1497_v8 = vld [vmem:[%s2436_s2] ss:$0 sm:$0xff]  ;;  %p1949_p3 = pnand %p1948_p2, %p1942_p13 }
  0x20   : > { %1741 = vmatprep.subr.bf16.mxu0 %v2001_v1  ;;  %1696 = vmatmul.mubr.msk.bf16.vlgmr.msra.gmra.mxu1 %vm295_vm2, %v2137_v21  ;;  %v2154_v28 = vsel %vm682_vm3, %v685_v24, %v690_v26  ;;  %v473_v18 = vld [vmem:[%s2437_s3] sm:$0xff] }
  0x21   : > { %1700 = vmatpush3.bf16.msra.mxu1 %v1893_v14  ;;  %1703 = vmatprep.mubr.msk.bf16.mxu1 %vm2002_vm0, %v2001_v1 }
  0x22   : > { %1701 = vmatprep.subr.bf16.mxu1 %v2001_v1 }
  0x23   : > { %1742 = vmatpush3.bf16.msra.mxu0 %v1903_v19  ;;  %v474_v19 = vld [vmem:[%s2437_s3 + $0x8] sm:$0xff] }
  0x24   : > { %1767 = vmatprep.subr.bf16.mxu0 %v2001_v1 }
  0x25   : > { %1702 = vmatpush3.bf16.msra.mxu1 %v1894_v22 }
  0x26   : > { %1744 = vmatmul.mubr.msk.bf16.vlgmr.msra.gmra.mxu0 %vm295_vm2, %v2154_v28  ;;  %1707 = vmatprep.subr.bf16.mxu1 %v2001_v1 }
  0x27   : > { %1783 = vmatprep.mubr.msk.bf16.mxu0 %vm2002_vm0, %v2001_v1  ;;  %1768 = vmatpush3.bf16.msra.mxu0 %v1905_v35 }
  0x28   : > { %1704 = vmatmul.mubr.msk.bf16.vlgmr.msra.gmra.mxu1 %vm295_vm2, %v2109_v4  ;;  %1769 = vmatprep.subr.bf16.mxu0 %v2001_v1 }
  0x29   : > { %1708 = vmatpush3.bf16.msra.mxu1 %v1895_v27  ;;  %1711 = vmatprep.mubr.msk.bf16.mxu1 %vm2002_vm0, %v2001_v1 }
  0x2a   : > { %1709 = vmatprep.subr.bf16.mxu1 %v2001_v1 }
  0x2b   : > { %1770 = vmatpush3.bf16.msra.mxu0 %v1906_v36  ;;  %v1527_v36 = vld [vmem:[%s2436_s2 + $0x1] ss:$0 sm:$0xff] }
  0x2c   : > { %1771 = vmatprep.subr.bf16.mxu0 %v2001_v1 }
  0x2d   : > { %1710 = vmatpush3.bf16.msra.mxu1 %v1896_v29 }
  0x2e   : > { %1715 = vmatprep.subr.bf16.mxu1 %v2001_v1 }
  0x2f   : > { %1772 = vmatpush3.bf16.msra.mxu0 %v1907_v37 }
  0x30   : > { %1712 = vmatmul.mubr.msk.bf16.vlgmr.msra.gmra.mxu1 %vm295_vm2, %v2173_v31  ;;  %1773 = vmatprep.subr.bf16.mxu0 %v2001_v1 }
  0x31   : > { %1716 = vmatpush3.bf16.msra.mxu1 %v1898_v30  ;;  %1719 = vmatprep.mubr.msk.bf16.mxu1 %vm2002_vm0, %v2001_v1 }
  0x32   : > { %1717 = vmatprep.subr.bf16.mxu1 %v2001_v1 }
  0x33   : > { %1774 = vmatpush3.bf16.msra.mxu0 %v1908_v38 }
  0x34   : > { %1775 = vmatprep.subr.bf16.mxu0 %v2001_v1 }
  0x35   : > { %1718 = vmatpush3.bf16.msra.mxu1 %v1900_v32 }
  0x36   : > { %1731 = vmatprep.subr.bf16.mxu1 %v2001_v1 }
  0x37   : > { %1776 = vmatpush3.bf16.msra.mxu0 %v1909_v39 }
  0x38   : > { %1720 = vmatmul.mubr.msk.bf16.vlgmr.msra.gmra.mxu1 %vm295_vm2, %v2137_v21  ;;  %1777 = vmatprep.subr.bf16.mxu0 %v2001_v1 }
  0x39   : > { %1732 = vmatpush3.bf16.msra.mxu1 %v1902_v33  ;;  %1735 = vmatprep.mubr.msk.bf16.mxu1 %vm2002_vm0, %v2001_v1 }
  0x3a   : > { %1733 = vmatprep.subr.bf16.mxu1 %v2001_v1 }
  0x3b   : > { %1778 = vmatpush3.bf16.msra.mxu0 %v1911_v41 }
  0x3c   : > { %1779 = vmatprep.subr.bf16.mxu0 %v2001_v1 }
  0x3d   : > { %1734 = vmatpush3.bf16.msra.mxu1 %v1904_v34 }
  0x3e   : > { %1747 = vmatprep.subr.bf16.mxu1 %v2001_v1 }
  0x3f   : > { %1780 = vmatpush3.bf16.msra.mxu0 %v1913_v43 }
  0x40   : > { %1736 = vmatmul.mubr.msk.bf16.vlgmr.msra.gmra.mxu1 %vm295_vm2, %v2173_v31  ;;  %1781 = vmatprep.subr.bf16.mxu0 %v2001_v1 }
  0x41   : > { %1763 = vmatprep.mubr.msk.bf16.mxu1 %vm2002_vm0, %v2001_v1  ;;  %1748 = vmatpush3.bf16.msra.mxu1 %v1910_v40 }
  0x42   : > { %1749 = vmatprep.subr.bf16.mxu1 %v2001_v1 }
  0x43   : > { %1782 = vmatpush3.bf16.msra.mxu0 %v1915_v45 }
  0x44   : > { %1795 = vmatprep.subr.bf16.mxu0 %v2001_v1 }
  0x45   : > { %1750 = vmatpush3.bf16.msra.mxu1 %v1912_v42 }
  0x46   : > { %1751 = vmatprep.subr.bf16.mxu1 %v2001_v1 }
  0x49   : > { %1752 = vmatpush3.bf16.msra.mxu1 %v1914_v44 }
  0x4a   : > { %1753 = vmatprep.subr.bf16.mxu1 %v2001_v1 }
  0x4d   : > { %1754 = vmatpush3.bf16.msra.mxu1 %v1916_v46 }
  0x4e   : > { %1755 = vmatprep.subr.bf16.mxu1 %v2001_v1 }
  0x51   : > { %1756 = vmatpush3.bf16.msra.mxu1 %v1917_v47 }
  0x52   : > { %1757 = vmatprep.subr.bf16.mxu1 %v2001_v1 }
  0x55   : > { %1758 = vmatpush3.bf16.msra.mxu1 %v1918_v48 }
  0x56   : > { %1759 = vmatprep.subr.bf16.mxu1 %v2001_v1 }
  0x59   : > { %1760 = vmatpush3.bf16.msra.mxu1 %v1919_v49 }
  0x5a   : > { %1761 = vmatprep.subr.bf16.mxu1 %v2001_v1 }
  0x5d   : > { %1762 = vmatpush3.bf16.msra.mxu1 %v1920_v50 }
  0x5e   : > { %1787 = vmatprep.subr.bf16.mxu1 %v2001_v1 }
  0xde   : > { %v610_v51 = vpop.f32.mrf.mxu0 }
  0xe0   : > { %v1729_v52 = vpop.f32.mrf.mxu0  ;;  %v333_v53 = vpop.f32.mrf.mxu1 }
  0xe1   : > { %v1529_v52 = vld [vmem:[%s2437_s3 + $0x18] sm:$0xff] }
  0xe2   : > { %v613_v54 = vpop.f32.mrf.mxu0  ;;  %v1697_v55 = vpop.f32.mrf.mxu1 }
  0xe4   : > { %v1730_v56 = vpop.f32.mrf.mxu0  ;;  %v336_v57 = vpop.f32.mrf.mxu1 }
  0xe6   : > { %v741_v58 = vpop.f32.mrf.mxu0  ;;  %v1698_v59 = vpop.f32.mrf.mxu1 }
  0xe8   : > { %v1745_v60 = vpop.f32.mrf.mxu0  ;;  %v388_v61 = vpop.f32.mrf.mxu1 }
  0xe9   : > { %v389_v6 = vadd.f32 %v388_v61, %v333_v53  ;;  %v1922_v53 = vld [vmem:[%s2435_s1 + $0xa8] sm:$0xff]   ;;  %v1926_v61 = vld [vmem:[%s2435_s1 + $0xd8] sm:$0xff]  }
  0xea   : > { %v744_v62 = vpop.f32.mrf.mxu0  ;;  %v1705_v63 = vpop.f32.mrf.mxu1 }
  0xec   : > { %v1746_v0 = vpop.f32.mrf.mxu0  ;;  %v391_v2 = vpop.f32.mrf.mxu1 }
  0xed   : > { %v392_v11 = vadd.f32 %v391_v2, %v336_v57  ;;  %v1928_v0 = vld [vmem:[%s2435_s1 + $0xd0] sm:$0xff]  }
  0xee   : > { %v1706_v3 = vpop.f32.mrf.mxu1 }
  0xf0   : > { %v453_v7 = vpop.f32.mrf.mxu1 }
  0xf1   : > { %v460_v9 = vadd.f32 %v453_v7, %v389_v6  ;;  %v1921_v7 = vld [vmem:[%s2435_s1 + $0xb8] sm:$0xff]  }
  0xf2   : > { %v1713_v10 = vpop.f32.mrf.mxu1 }
  0xf3   : > { %v469_v12 = vadd.f32 %v1497_v8, %v460_v9  ;;  %v1923_v9 = vld [vmem:[%s2435_s1 + $0xb0] sm:$0xff]   ;;  %v1925_v10 = vld [vmem:[%s2435_s1 + $0xc8] sm:$0xff]  }
  0xf4   : > { %v456_v13 = vpop.f32.mrf.mxu1 }
  0xf5   : > { %v461_v14 = vadd.f32 %v456_v13, %v392_v11  ;;  %v471_v16 = vmax.f32 %v469_v12, 0.0  ;;  %v1929_v11 = vld [vmem:[%s2435_s1 + $0xe8] sm:$0xff]   ;;  %v1210_v12 = vrot.slane %v2109_v4, 2  ;;  %v1211_v13 = vrot.slane %v2111_v5, 2 }
  0xf6   : > { %v1714_v15 = vpop.f32.mrf.mxu1  ;;  %v1933_v5 = vld [vmem:[%s2438_s4 + $0xa8] sm:$0xff]  }
  0xf7   : > { %v470_v17 = vadd.f32 %v1497_v8, %v461_v14  ;;  %v475_v24 = vmul.f32 %v473_v18, %v471_v16  ;;  %v1212_v14 = vsel %vm1209_vm5, %v1210_v12, %v1211_v13  ;;  %v1934_v15 = vld [vmem:[%s2438_s4 + $0xa0] sm:$0xff]   ;;  %v1935_v16 = vld [vmem:[%s2438_s4 + $0x98] sm:$0xff]   ;;  %v1937_v18 = vld [vmem:[%s2438_s4 + $0x88] sm:$0xff]  }
  0xf8   : > { %v557_v20 = vpop.f32.mrf.mxu1 }
  0xf9   : > { %v472_v22 = vmax.f32 %v470_v17, 0.0  ;;  %v611_v32 = vadd.f32 %v610_v51, %v557_v20  ;;  %v1528_v51 = vld [vmem:[%s2437_s3 + $0x10] sm:$0xff] }
  0xfa   : > { %v1721_v23 = vpop.f32.mrf.mxu1  ;;  %v1936_v17 = vld [vmem:[%s2438_s4 + $0x90] sm:$0xff]  }
  0xfb   : > { %v476_v25 = vmul.f32 %v474_v19, %v472_v22  ;;  %v1938_v19 = vld [vmem:[%s2438_s4 + $0x80] sm:$0xff]  }
  0xfc   : > { %v560_v26 = vpop.f32.mrf.mxu1 }
  0xfd   : > { %v477_v27 = vmax.f32 %v475_v24, %v476_v25  ;;  %v614_v39 = vadd.f32 %v613_v54, %v560_v26 }
  0xfe   : > { %v1722_v29 = vpop.f32.mrf.mxu1 }
  0xff   : > { %v478_v30 = vrot.slane %v477_v27, 4 }
 0x100   : > { %v668_v33 = vpop.f32.mrf.mxu1 }
 0x101   : > { %v479_v34 = vmax.f32 %v477_v27, %v478_v30  ;;  %v675_v35 = vadd.f32 %v668_v33, %v611_v32 }
 0x102   : > { %v1737_v37 = vpop.f32.mrf.mxu1 }
 0x103   : > { %v480_v38 = vrot.slane %v479_v34, 2  ;;  %v748_v40 = vadd.f32 %v741_v58, %v675_v35  ;;  %v1924_v58 = vld [vmem:[%s2435_s1 + $0xa0] sm:$0xff]  }
 0x104   : > { %v671_v41 = vpop.f32.mrf.mxu1 }
 0x105   : > { %v758_v42 = vadd.f32 %v1527_v36, %v748_v40  ;;  %v676_v43 = vadd.f32 %v671_v41, %v614_v39  ;;  %v481_v44 = vmax.f32 %v479_v34, %v480_v38 }
 0x106   : > { %v1738_v45 = vpop.f32.mrf.mxu1 }
 0x107   : > { %v749_v46 = vadd.f32 %v744_v62, %v676_v43  ;;  %v482_v47 = vrot.slane %v481_v44, 1  ;;  %v760_v48 = vmax.f32 %v758_v42, 0.0 }
 0x109   : > { %v759_v49 = vadd.f32 %v1527_v36, %v749_v46  ;;  %v483_v50 = vmax.f32 %v481_v44, %v482_v47  ;;  %v765_v56 = vmul.f32 %v1528_v51, %v760_v48 }
 0x10b   : > { %v761_v54 = vmax.f32 %v759_v49, 0.0  ;;  %v484_v55 = vpack.c.bf16 %v483_v50, %v483_v50 }
 0x10d   : > { %v766_v57 = vmul.f32 %v1529_v52, %v761_v54  ;;  %1784 = vmatmul.mubr.bf16.vlgmr.msra.gmra.mxu0 %v484_v55 }
 0x10e   : > { %1796 = vmatpush3.bf16.msra.mxu0 %v1922_v53  ;;  %1799 = vmatprep.mubr.msk.bf16.mxu0 %vm2002_vm0, %v2001_v1  ;;  %v1598_v53 = vld [vmem:[%s2436_s2 + $0x2] ss:$0 sm:$0xff] }
 0x10f   : > { %v767_v59 = vmax.f32 %v765_v56, %v766_v57  ;;  %1797 = vmatprep.subr.bf16.mxu0 %v2001_v1 }
 0x111   : > { %v768_v60 = vrot.slane %v767_v59, 4 }
 0x112   : > { %1798 = vmatpush3.bf16.msra.mxu0 %v1924_v58 }
 0x113   : > { %v769_v62 = vmax.f32 %v767_v59, %v768_v60  ;;  %1811 = vmatprep.subr.bf16.mxu0 %v2001_v1 }
 0x115   : > { %v770_v63 = vrot.slane %v769_v62, 2  ;;  %1800 = vmatmul.mubr.msk.bf16.vlgmr.msra.gmra.mxu0 %vm295_vm2, %v2109_v4  ;;  %v1932_v4 = vld [vmem:[%s2438_s4 + $0xb0] sm:$0xff]  }
 0x116   : > { %1812 = vmatpush3.bf16.msra.mxu0 %v1926_v61  ;;  %1815 = vmatprep.mubr.msk.bf16.mxu0 %vm2002_vm0, %v2001_v1 }
 0x117   : > { %v771_v2 = vmax.f32 %v769_v62, %v770_v63  ;;  %1813 = vmatprep.subr.bf16.mxu0 %v2001_v1  ;;  %v1599_v63 = vld [vmem:[%s2437_s3 + $0x20] sm:$0xff] }
 0x119   : > { %v772_v3 = vrot.slane %v771_v2, 1 }
 0x11a   : > { %1814 = vmatpush3.bf16.msra.mxu0 %v1928_v0  ;;  %v1600_v0 = vld [vmem:[%s2437_s3 + $0x28] sm:$0xff] }
 0x11b   : > { %v773_v6 = vmax.f32 %v771_v2, %v772_v3  ;;  %1827 = vmatprep.subr.bf16.mxu0 %v2001_v1 }
 0x11d   : > { %v774_v8 = vpack.c.bf16 %v773_v6, %v773_v6  ;;  %1816 = vmatmul.mubr.msk.bf16.vlgmr.msra.gmra.mxu0 %vm295_vm2, %v2154_v28  ;;  %v1927_v28 = vld [vmem:[%s2435_s1 + $0xc0] sm:$0xff]  }
 0x11e   : > { %1843 = vmatprep.mubr.msk.bf16.mxu0 %vm2002_vm0, %v2001_v1 }
 0x11f   : > { %1764 = vmatmul.mubr.bf16.vlgmr.msra.gmra.mxu1 %v774_v8 }
 0x120   : > { %1788 = vmatpush3.bf16.msra.mxu1 %v1921_v7  ;;  %1791 = vmatprep.mubr.msk.bf16.mxu1 %vm2002_vm0, %v2001_v1 }
 0x121   : > { %1789 = vmatprep.subr.bf16.mxu1 %v2001_v1 }
 0x124   : > { %1790 = vmatpush3.bf16.msra.mxu1 %v1923_v9 }
 0x125   : > { %1803 = vmatprep.subr.bf16.mxu1 %v2001_v1 }
 0x127   : > { %1792 = vmatmul.mubr.msk.bf16.vlgmr.msra.gmra.mxu1 %vm295_vm2, %v2137_v21  ;;  %v1930_v21 = vld [vmem:[%s2435_s1 + $0xe0] sm:$0xff]  }
 0x128   : > { %1804 = vmatpush3.bf16.msra.mxu1 %v1925_v10  ;;  %1807 = vmatprep.mubr.msk.bf16.mxu1 %vm2002_vm0, %v2001_v1 }
 0x129   : > { %1805 = vmatprep.subr.bf16.mxu1 %v2001_v1 }
 0x12c   : > { %1806 = vmatpush3.bf16.msra.mxu1 %v1927_v28 }
 0x12d   : > { %1819 = vmatprep.subr.bf16.mxu1 %v2001_v1 }
 0x12f   : > { %1808 = vmatmul.mubr.msk.bf16.vlgmr.msra.gmra.mxu1 %vm295_vm2, %v2173_v31  ;;  %v1931_v31 = vld [vmem:[%s2438_s4 + $0xb8] sm:$0xff]  }
 0x130   : > { %1820 = vmatpush3.bf16.msra.mxu1 %v1929_v11  ;;  %1823 = vmatprep.mubr.msk.bf16.mxu1 %vm2002_vm0, %v2001_v1 }
 0x131   : > { %1821 = vmatprep.subr.bf16.mxu1 %v2001_v1  ;;  %1828 = vmatpush3.bf16.msra.mxu0 %v1931_v31 }
 0x132   : > { %1829 = vmatprep.subr.bf16.mxu0 %v2001_v1 }
 0x134   : > { %1822 = vmatpush3.bf16.msra.mxu1 %v1930_v21 }
 0x135   : > { %1830 = vmatpush3.bf16.msra.mxu0 %v1932_v4 }
 0x136   : > { %1831 = vmatprep.subr.bf16.mxu0 %v2001_v1 }
 0x137   : > { %1824 = vmatmul.mubr.msk.bf16.vlgmr.msra.gmra.mxu1 %vm295_vm2, %v1212_v14  ;;  %v1402_v14 = vld [vmem:[%s2439_s5] sm:$0x1] }
 0x139   : > { %1832 = vmatpush3.bf16.msra.mxu0 %v1933_v5 }
 0x13a   : > { %1833 = vmatprep.subr.bf16.mxu0 %v2001_v1 }
 0x13d   : > { %1834 = vmatpush3.bf16.msra.mxu0 %v1934_v15 }
 0x13e   : > { %1835 = vmatprep.subr.bf16.mxu0 %v2001_v1 }
 0x141   : > { %1836 = vmatpush3.bf16.msra.mxu0 %v1935_v16 }
 0x142   : > { %1837 = vmatprep.subr.bf16.mxu0 %v2001_v1 }
 0x145   : > { %1838 = vmatpush3.bf16.msra.mxu0 %v1936_v17 }
 0x146   : > { %1839 = vmatprep.subr.bf16.mxu0 %v2001_v1 }
 0x149   : > { %1840 = vmatpush3.bf16.msra.mxu0 %v1937_v18 }
 0x14a   : > { %1841 = vmatprep.subr.bf16.mxu0 %v2001_v1 }
 0x14d   : > { %1842 = vmatpush3.bf16.msra.mxu0 %v1938_v19 }
 0x1cd   : > { %v962_v20 = vpop.f32.mrf.mxu0 }
 0x1cf   : > { %v1785_v22 = vpop.f32.mrf.mxu0 }
 0x1d1   : > { %v965_v23 = vpop.f32.mrf.mxu0 }
 0x1d3   : > { %v1786_v24 = vpop.f32.mrf.mxu0 }
 0x1d5   : > { %v1077_v25 = vpop.f32.mrf.mxu0 }
 0x1d7   : > { %v1801_v26 = vpop.f32.mrf.mxu0 }
 0x1d9   : > { %v1080_v27 = vpop.f32.mrf.mxu0 }
 0x1db   : > { %v1802_v29 = vpop.f32.mrf.mxu0 }
 0x1dd   : > { %v1195_v30 = vpop.f32.mrf.mxu0 }
 0x1df   : > { %v874_v32 = vpop.f32.mrf.mxu1  ;;  %v1817_v33 = vpop.f32.mrf.mxu0 }
 0x1e0   : > { %v963_v34 = vadd.f32 %v962_v20, %v874_v32 }
 0x1e1   : > { %v1765_v35 = vpop.f32.mrf.mxu1  ;;  %v1198_v36 = vpop.f32.mrf.mxu0 }
 0x1e3   : > { %v877_v37 = vpop.f32.mrf.mxu1  ;;  %v1818_v38 = vpop.f32.mrf.mxu0 }
 0x1e5   : > { %v1766_v39 = vpop.f32.mrf.mxu1 }
 0x1e7   : > { %v1024_v40 = vpop.f32.mrf.mxu1 }
 0x1e8   : > { %v1078_v44 = vadd.f32 %v1077_v25, %v1024_v40 }
 0x1e9   : > { %v1793_v1 = vpop.f32.mrf.mxu1 }
 0x1eb   : > { %v1027_v41 = vpop.f32.mrf.mxu1 }
 0x1ec   : > { %v1081_v48 = vadd.f32 %v1080_v27, %v1027_v41 }
 0x1ed   : > { %v1794_v42 = vpop.f32.mrf.mxu1 }
 0x1ef   : > { %v1135_v43 = vpop.f32.mrf.mxu1 }
 0x1f0   : > { %v1142_v46 = vadd.f32 %v1135_v43, %v1078_v44 }
 0x1f1   : > { %v1809_v45 = vpop.f32.mrf.mxu1 }
 0x1f2   : > { %v1202_v50 = vadd.f32 %v1195_v30, %v1142_v46 }
 0x1f3   : > { %v1138_v47 = vpop.f32.mrf.mxu1 }
 0x1f4   : > { %v1143_v51 = vadd.f32 %v1138_v47, %v1081_v48 }
 0x1f5   : > { %v1810_v49 = vpop.f32.mrf.mxu1 }
 0x1f6   : > { %v1203_v56 = vadd.f32 %v1198_v36, %v1143_v51 }
 0x1f7   : > { %v1262_v52 = vpop.f32.mrf.mxu1 }
 0x1f8   : > { %v1269_v54 = vadd.f32 %v1262_v52, %v1202_v50 }
 0x1f9   : > { %v1825_v55 = vpop.f32.mrf.mxu1 }
 0x1fa   : > { %v1279_v57 = vadd.f32 %v1598_v53, %v1269_v54 }
 0x1fb   : > { %v1265_v58 = vpop.f32.mrf.mxu1 }
 0x1fc   : > { %v1270_v59 = vadd.f32 %v1265_v58, %v1203_v56  ;;  %v1281_v61 = vmax.f32 %v1279_v57, 0.0 }
 0x1fd   : > { %v1826_v60 = vpop.f32.mrf.mxu1 }
 0x1fe   : > { %v1280_v62 = vadd.f32 %v1598_v53, %v1270_v59  ;;  %v1286_v3 = vmul.f32 %v1599_v63, %v1281_v61 }
 0x200   : > { %v1282_v2 = vmax.f32 %v1280_v62, 0.0 }
 0x202   : > { %v1287_v6 = vmul.f32 %v1600_v0, %v1282_v2 }
 0x204   : > { %v1288_v7 = vmax.f32 %v1286_v3, %v1287_v6 }
 0x206   : > { %v1289_v8 = vrot.slane %v1288_v7, 4 }
 0x208   : > { %v1290_v9 = vmax.f32 %v1288_v7, %v1289_v8 }
 0x20a   : > { %v1291_v10 = vrot.slane %v1290_v9, 2 }
 0x20c   : > { %v1292_v28 = vmax.f32 %v1290_v9, %v1291_v10 }
 0x20e   : > { %v1293_v11 = vrot.slane %v1292_v28, 1 }
 0x210   : > { %v1294_v21 = vmax.f32 %v1292_v28, %v1293_v11 }
 0x212   : > { %v1295_v12 = vpack.c.bf16 %v1294_v21, %v1294_v21 }
 0x214   : > { %1844 = vmatmul.mubr.bf16.vlgmr.msra.gmra.mxu0 %v1295_v12 }
 0x2d4   : > { %v1395_v13 = vpop.f32.mrf.mxu0 }
 0x2d5   : > { %v1401_v31 = vadd.f32 %v1395_v13, %v963_v34 }
 0x2d6   : > { %v1845_v4 = vpop.f32.mrf.mxu0 }
 0x2d7   : > { %v1403_v5 = vadd.f32 %v1402_v14, %v1401_v31 }
 0x2d8   : > { %v1398_v15 = vpop.f32.mrf.mxu0 }
 0x2d9   : > { %1404 = vst [vmem:[%s243_s12] sm:$0x1] %v1403_v5 }
 0x2da   : > { %v1846_v16 = vpop.f32.mrf.mxu0 }
 0x2db   : > { %1952 = shalt.err (!%p1949_p3)
}
 0x2dc   : > { %s1953_s26 = scalar_lea.hbm %s2393_s16, 16  ;;  %s1957_s9 = scalar_lea.hbm %s2440_s6, 32 }
 0x2dd   : > { %p1954_p4 = scmp.ne.s32.totalorder %s2393_s16, %s1953_s26  ;;  %p1958_p9 = scmp.lt.s32.totalorder %s2393_s16, %s2440_s6 }
 0x2de   : > { %p1959_p10 = scmp.lt.s32.totalorder %s1957_s9, %s1953_s26 }
 0x2df   : > { %p1955_p7 = pnand %p1954_p4, %p2077_p5 }
 0x2e0   : > { %p1960_p11 = por %p1959_p10, %p1958_p9 }
 0x2e1   : > { %p1956_p8 = pneg %p1955_p7 }
 0x2e3   : > { %p1961_p12 = pnand %p1960_p11, %p1956_p8 }
 0x2e5   : > { %1964 = shalt.err (!%p1961_p12)
}
 0x2e6   : > { %1848 = dma.vmem_to_hbm [thread:$0]  (%p2077_p5), %s2395_s13, 16, %s2393_s16, %s1406_s17  }
 0x2e7 PF: > { %p1854_p13 = scmp.ge.s32.totalorder %s1999_s24, 2  ;;  %s1430_s12 = sand.u32 1, %s1987_s21  }
 0x2e8   : > { %s1431_s14 = scalar_lea.sflag [#allocation3], %s1430_s12 }
 0x2e9   : > { %p1851_p0 = pnand %p1854_p13, %p2081_p6 }
 0x2eb   : > { %p1852_p1 = pneg %p1851_p0 }
 0x2ed   : > { %1982 = dma.done.wait (%p1852_p1), %s1431_s14, 16  }
 0x2ee   : > { %1984 = vsyncadd (%p1852_p1), %s1431_s14, 4294967280  ;;  %p16_p2 = scmp.ge.s32.totalorder %s2064_s27, 4   ;;  %s2443_s21 = smov %s1991_s22 }
 0x2ef   : > { %s2444_s22 = smov %s1995_s23  ;;  %s2445_s23 = smov %s2075_s30 }
 0x2f0   : > { %s2446_s24 = smov %s2064_s27  ;;  %18 = sbr.rel (!%p16_p2) target bundleno = 3 (0x3), region = 96 }
 0x2f5   :  { %1435 = vsyncpa [#allocation3], 1 }
 0x2f6   :  { %1437 = vsyncpa [#allocation3 + $0x1], 1 }

</bundles_post_ra>
